<compile_context>
chip_gen: v5e
topology: v5e:2x2
jax: 0.10.0
libtpu: 0.0.40
codegen_flags: <defaults>
</compile_context>

<pallas_src>
from functools import partial

import jax
import jax.numpy as jnp
from jax import lax
from jax.experimental import pallas as pl
from jax.experimental.pallas import tpu as pltpu


def _l2_normalize(x):
    """F.normalize(p=2, dim=1): x / max(||x||_2, 1e-12)."""
    x = x.astype(jnp.float32)
    n = jnp.sqrt(jnp.sum(x * x, axis=1, keepdims=True))
    return x / jnp.maximum(n, 1e-12)


def _ntxent_kernel(r1_ref, r2_ref, zc_ref, loss_ref, corr_ref,
                   zrow, acc_sum, acc_max,
                   *, inv_tau, batch_size, lane_w):
    """Grid = (row tiles over B, column tiles over 2B); columns = reduction.

    Row tile i covers rows [i*tm, i*tm+tm) of BOTH halves of z = [n1; n2]
    (they share the same positive pair); column tile j supplies rows
    [j*tn, j*tn+tn) of the concatenated, pre-normalized z.
    """
    j = pl.program_id(1)
    n_col = pl.num_programs(1)
    tm = r1_ref.shape[0]
    tn = zc_ref.shape[0]
    tau = 1.0 / inv_tau

    @pl.when(j == 0)
    def _init():
        # Stack the (already normalized, already 1/tau-scaled) row halves once
        # per row tile; the stacked block is reused for every column step.
        zrow[0:tm, :] = r1_ref[...].astype(zrow.dtype)
        zrow[tm:2 * tm, :] = r2_ref[...].astype(zrow.dtype)
        acc_sum[...] = jnp.zeros_like(acc_sum)
        acc_max[...] = jnp.full_like(acc_max, -jnp.inf)

    # Single MXU matmul per step: [2tm, C] x [C, tn] -> s = sim / tau.
    s = lax.dot_general(zrow[...], zc_ref[...], (((1,), (1,)), ((), ())),
                        preferred_element_type=jnp.float32)
    # exp((sim - 1)/tau): identical loss (the e^{-1/tau} factor cancels between
    # positive and negatives) but exponents stay <= 0 for small temperatures.
    e = jnp.exp(s - inv_tau)

    # Lane-parallel partial accumulation: plain VPU adds/maxes into
    # [2tm, lane_w] accumulators; the cross-lane reduce happens only once,
    # in the finalize step.
    psum = acc_sum[...]
    pmax = acc_max[...]
    for c in range(tn // lane_w):
        sl = slice(c * lane_w, (c + 1) * lane_w)
        psum = psum + e[:, sl]
        pmax = jnp.maximum(pmax, s[:, sl])
    acc_sum[...] = psum
    acc_max[...] = pmax

    @pl.when(j == n_col - 1)
    def _finalize():
        n_total = 2 * batch_size
        total = jnp.sum(acc_sum[...], axis=1, keepdims=True)     # [2tm, 1]
        rmax = jnp.max(acc_max[...], axis=1, keepdims=True)      # [2tm, 1]

        # Positive pair in sim/tau space: r1 and r2 are both scaled by 1/tau,
        # so sum(r1*r2) = cos * inv_tau^2; one multiply by tau fixes the scale.
        pos_s = jnp.sum(r1_ref[...] * r2_ref[...], axis=1, keepdims=True) * tau
        pos_log = pos_s - inv_tau                                 # shifted log(pos)
        pos_exp = jnp.exp(pos_log)

        # Negatives keep the self-similarity term, exactly like the reference.
        neg1 = total[0:tm, :] - pos_exp                           # half-1 rows
        neg2 = total[tm:2 * tm, :] - pos_exp                      # half-2 rows
        # per-sample loss = (pairs_loss[i] + pairs_loss[i+B]) / (2B)
        loss_ref[...] = (jnp.log(neg1) + jnp.log(neg2) - 2.0 * pos_log) * (1.0 / n_total)

        # Rank-0 test: the running max includes the diagonal and the positive
        # itself, and x >= max(m, x) <=> x >= m, so this reproduces the
        # reference's masked comparison with no mask (exp is monotone, 1/tau
        # scaling is monotone).
        c1 = (pos_s >= rmax[0:tm, :]).astype(jnp.float32)
        c2 = (pos_s >= rmax[tm:2 * tm, :]).astype(jnp.float32)
        corr_ref[...] = c1 + c2                                   # 0, 1 or 2


def _pick_tile(dim, candidates):
    for c in candidates:
        if c <= dim and dim % c == 0:
            return c
    return dim


def ntxent_loss(z1, z2, temperature=0.1, *, tile_rows=None, tile_cols=None,
                use_bf16_matmul=False):
    """Pallas implementation of NTXentLoss(temperature, reduce=True).forward."""
    B, C = z1.shape
    assert z2.shape == (B, C), (z1.shape, z2.shape)
    N = 2 * B
    inv_tau = 1.0 / float(temperature)

    # Hoisted preprocessing (one O(B*C) pass, outside the grid): normalize
    # both views once, build the concatenated column operand, and pre-scale
    # the row operands by 1/tau so the kernel matmul yields sim/tau directly.
    n1 = _l2_normalize(z1)
    n2 = _l2_normalize(z2)
    zc = jnp.concatenate([n1, n2], axis=0)                 # [2B, C] columns
    r1 = n1 * inv_tau                                      # [B, C] rows, half 1
    r2 = n2 * inv_tau                                      # [B, C] rows, half 2

    # Optional bf16 operand path for the MXU (v6e/v7x); f32 accumulation and
    # f32 exp/log are kept either way.
    # TODO(synk): with tau=0.1 the (s-1)/tau exponent amplifies bf16 sim error
    #             ~10x; validate tolerance before enabling in production.
    mxu_dtype = jnp.bfloat16 if use_bf16_matmul else jnp.float32
    zc = zc.astype(mxu_dtype)

    # Tile picking. Defaults keep the per-step footprint ~<= 13 MiB f32 (safe
    # for v7x's 64 MiB VMEM with the 32 MiB scoped limit below) and cap the
    # row tile at B/2 so the "parallel" row axis has >= 2 tiles and both v7x
    # TensorCores get work (no effect on single-TC v5e/v6e correctness).
    if tile_rows is None:
        row_cap = B // 2 if B >= 16 else B
        tile_rows = _pick_tile(
            B, tuple(c for c in (256, 128, 64, 32, 16, 8) if c <= row_cap))
    tm = tile_rows
    if tile_cols is None:
        # Large column tiles amortize the per-step overhead; when 2B fits a
        # single tile the whole column operand stays resident in VMEM and is
        # DMA'd from HBM exactly once (biggest win on v5e's lower HBM BW).
        budget = 8 * 1024 * 1024
        cands = tuple(c for c in (2048, 1024, 512, 256, 128, 64, 32, 16, 8)
                      if c * C * 8 <= budget and 2 * tm * c * 8 <= budget)
        tile_cols = _pick_tile(N, cands or (8,))
    tn = tile_cols
    if B % tm or N % tn:
        raise ValueError(f"tile sizes ({tm},{tn}) must divide (B, 2B)=({B},{N})")
    n_rt, n_ct = B // tm, N // tn
    lane_w = 128 if tn % 128 == 0 else tn                  # lane-chunk width

    per_loss, per_corr = pl.pallas_call(
        partial(_ntxent_kernel, inv_tau=inv_tau, batch_size=B, lane_w=lane_w),
        out_shape=(jax.ShapeDtypeStruct((B, 1), jnp.float32),   # per-sample loss
                   jax.ShapeDtypeStruct((B, 1), jnp.float32)),  # correct / pair
        grid=(n_rt, n_ct),
        in_specs=[
            pl.BlockSpec((tm, C), lambda i, j: (i, 0)),          # scaled n1 rows
            pl.BlockSpec((tm, C), lambda i, j: (i, 0)),          # scaled n2 rows
            pl.BlockSpec((tn, C), lambda i, j: (j, 0)),          # concat z cols
        ],
        out_specs=(pl.BlockSpec((tm, 1), lambda i, j: (i, 0)),
                   pl.BlockSpec((tm, 1), lambda i, j: (i, 0))),
        scratch_shapes=[
            pltpu.VMEM((2 * tm, C), mxu_dtype),          # stacked row halves
            pltpu.VMEM((2 * tm, lane_w), jnp.float32),   # lane-parallel sum(exp)
            pltpu.VMEM((2 * tm, lane_w), jnp.float32),   # lane-parallel running max
        ],
        compiler_params=pltpu.CompilerParams(
            # Column axis is the reduction -> innermost + "arbitrary" (the
            # scratch init/finalize relies on this ordering); row axis is
            # "parallel" for v7x megacore sharding.
            dimension_semantics=("parallel", "arbitrary"),
            # 32 MiB: within every generation's budget (v7x has only 64 MiB
            # physical VMEM), and far above the default-tile footprint.
            vmem_limit_bytes=32 * 1024 * 1024),
    )(r1, r2, zc)

    loss = jnp.sum(per_loss) / B    # reduce=True -> mean over batch
    acc = jnp.sum(per_corr) / N
    return loss, acc


def ntxent_ref(z1, z2, temperature=0.1):
    """Pure-JAX reference replicating the PyTorch forward."""
    B = z1.shape[0]
    N = 2 * B
    n1 = z1 / jnp.maximum(jnp.linalg.norm(z1, axis=1, keepdims=True), 1e-12)
    n2 = z2 / jnp.maximum(jnp.linalg.norm(z2, axis=1, keepdims=True), 1e-12)
    z = jnp.concatenate([n1, n2], axis=0)
    S = jnp.exp(jnp.einsum('ic,jc->ij', z, z,
                           precision=lax.Precision.HIGHEST) / temperature)
    idx = jnp.arange(N)
    pos_idx = (idx + B) % N
    positive = S[idx, pos_idx]
    negative = S.sum(axis=1) - positive
    pairs_loss = -jnp.log(positive / negative)
    loss = (pairs_loss.reshape(2, B).sum(axis=0) / N).mean()
    masked = S.at[idx, pos_idx].set(-9e32)
    acc = (positive >= masked.max(axis=1)).astype(jnp.float32).mean()
    return loss, acc


if __name__ == "__main__":
    key = jax.random.PRNGKey(0)
    k1, k2 = jax.random.split(key)

    # Small shape consistent with the module (SimCLR projections [B, C]).
    B, C = 8, 128
    z1 = jax.random.normal(k1, (B, C), dtype=jnp.float32)
    z2 = jax.random.normal(k2, (B, C), dtype=jnp.float32)

    loss, acc = ntxent_loss(z1, z2, temperature=0.1)
    jax.block_until_ready((loss, acc))
    ref_loss, ref_acc = ntxent_ref(z1, z2, temperature=0.1)
    assert jnp.allclose(loss, ref_loss, rtol=2e-3, atol=1e-4), (loss, ref_loss)
    assert jnp.allclose(acc, ref_acc), (acc, ref_acc)

    # Also exercise the multi-tile grid path (4 row tiles x 4 column tiles
    # over the concatenated 2B axis).
    k3, k4 = jax.random.split(k2)
    B2, C2 = 64, 128
    z1b = jax.random.normal(k3, (B2, C2), dtype=jnp.float32)
    z2b = jax.random.normal(k4, (B2, C2), dtype=jnp.float32)
    loss2, acc2 = ntxent_loss(z1b, z2b, temperature=0.1,
                              tile_rows=16, tile_cols=32)
    jax.block_until_ready((loss2, acc2))
    ref_loss2, ref_acc2 = ntxent_ref(z1b, z2b, temperature=0.1)
    assert jnp.allclose(loss2, ref_loss2, rtol=2e-3, atol=1e-4), (loss2, ref_loss2)
    assert jnp.allclose(acc2, ref_acc2), (acc2, ref_acc2)

    print("KERNEL_OK")
</pallas_src>

<mosaic_0001>
module attributes {stable_mosaic.version = 11 : i64} {
  func.func @_ntxent_kernel(%arg0: i32, %arg1: i32, %arg2: memref<8x128xf32, #tpu.memory_space<vmem>>, %arg3: memref<8x128xf32, #tpu.memory_space<vmem>>, %arg4: memref<16x128xf32, #tpu.memory_space<vmem>>, %arg5: memref<8x1xf32, #tpu.memory_space<vmem>>, %arg6: memref<8x1xf32, #tpu.memory_space<vmem>>, %arg7: memref<16x128xf32, #tpu.memory_space<vmem>>, %arg8: memref<16x16xf32, #tpu.memory_space<vmem>>, %arg9: memref<16x16xf32, #tpu.memory_space<vmem>>) attributes {dimension_semantics = [#tpu.dimension_semantics<parallel>, #tpu.dimension_semantics<arbitrary>], iteration_bounds = array<i64: 1, 1>, scalar_prefetch = 0 : i64, scratch_operands = 3 : i64, tpu.core_type = #tpu.core_type<tc>, window_params = [{transform_indices = @transform_0, window_bounds = array<i64: 8, 128>}, {transform_indices = @transform_1, window_bounds = array<i64: 8, 128>}, {transform_indices = @transform_2, window_bounds = array<i64: 16, 128>}, {transform_indices = @transform_3, window_bounds = array<i64: 8, 1>}, {transform_indices = @transform_4, window_bounds = array<i64: 8, 1>}]} {
    %c0_i32 = arith.constant 0 : i32
    %0 = arith.cmpi eq, %arg1, %c0_i32 : i32
    %1 = arith.extui %0 : i1 to i32
    %c0_i32_0 = arith.constant 0 : i32
    %2 = arith.cmpi ne, %1, %c0_i32_0 : i32
    scf.if %2 {
      %c0_15 = arith.constant 0 : index
      %c0_16 = arith.constant 0 : index
      %18 = vector.load %arg2[%c0_15, %c0_16] : memref<8x128xf32, #tpu.memory_space<vmem>>, vector<8x128xf32>
      %c0_17 = arith.constant 0 : index
      %c0_18 = arith.constant 0 : index
      %19 = vector.load %arg7[%c0_17, %c0_18] : memref<16x128xf32, #tpu.memory_space<vmem>>, vector<8x128xf32>
      tpu.vector_store %arg7[%c0_17, %c0_18], %18 {strides = array<i32>} : memref<16x128xf32, #tpu.memory_space<vmem>>, vector<8x128xf32>,
      %c0_19 = arith.constant 0 : index
      %c0_20 = arith.constant 0 : index
      %20 = vector.load %arg3[%c0_19, %c0_20] : memref<8x128xf32, #tpu.memory_space<vmem>>, vector<8x128xf32>
      %c8 = arith.constant 8 : index
      %c0_21 = arith.constant 0 : index
      %21 = vector.load %arg7[%c8, %c0_21] : memref<16x128xf32, #tpu.memory_space<vmem>>, vector<8x128xf32>
      tpu.vector_store %arg7[%c8, %c0_21], %20 {strides = array<i32>} : memref<16x128xf32, #tpu.memory_space<vmem>>, vector<8x128xf32>,
      %cst_22 = arith.constant 0.000000e+00 : f32
      %22 = vector.broadcast %cst_22 : f32 to vector<16x16xf32>
      %c0_23 = arith.constant 0 : index
      %c0_24 = arith.constant 0 : index
      %23 = vector.load %arg8[%c0_23, %c0_24] : memref<16x16xf32, #tpu.memory_space<vmem>>, vector<16x16xf32>
      tpu.vector_store %arg8[%c0_23, %c0_24], %22 {strides = array<i32>} : memref<16x16xf32, #tpu.memory_space<vmem>>, vector<16x16xf32>,
      %cst_25 = arith.constant 0xFF800000 : f32
      %24 = vector.broadcast %cst_25 : f32 to vector<16x16xf32>
      %c0_26 = arith.constant 0 : index
      %c0_27 = arith.constant 0 : index
      %25 = vector.load %arg9[%c0_26, %c0_27] : memref<16x16xf32, #tpu.memory_space<vmem>>, vector<16x16xf32>
      tpu.vector_store %arg9[%c0_26, %c0_27], %24 {strides = array<i32>} : memref<16x16xf32, #tpu.memory_space<vmem>>, vector<16x16xf32>,
    } else {
    }
    %c0 = arith.constant 0 : index
    %c0_1 = arith.constant 0 : index
    %3 = vector.load %arg7[%c0, %c0_1] : memref<16x128xf32, #tpu.memory_space<vmem>>, vector<16x128xf32>
    %c0_2 = arith.constant 0 : index
    %c0_3 = arith.constant 0 : index
    %4 = vector.load %arg4[%c0_2, %c0_3] : memref<16x128xf32, #tpu.memory_space<vmem>>, vector<16x128xf32>
    %cst = arith.constant dense<0.000000e+00> : vector<16x16xf32>
    %5 = tpu.matmul %3, %4, %cst {dimension_numbers = #tpu.dot_dimension_numbers<[1], [1], [0], [0], [0, 0, 1, 0], [], []>} : vector<16x128xf32>, vector<16x128xf32>, vector<16x16xf32> -> vector<16x16xf32>
    %cst_4 = arith.constant 1.000000e+01 : f32
    %6 = vector.broadcast %cst_4 : f32 to vector<16x16xf32>
    %7 = arith.subf %5, %6 : vector<16x16xf32>
    %8 = math.exp %7 : vector<16x16xf32>
    %c0_5 = arith.constant 0 : index
    %c0_6 = arith.constant 0 : index
    %9 = vector.load %arg8[%c0_5, %c0_6] : memref<16x16xf32, #tpu.memory_space<vmem>>, vector<16x16xf32>
    %c0_7 = arith.constant 0 : index
    %c0_8 = arith.constant 0 : index
    %10 = vector.load %arg9[%c0_7, %c0_8] : memref<16x16xf32, #tpu.memory_space<vmem>>, vector<16x16xf32>
    %11 = arith.addf %9, %8 : vector<16x16xf32>
    %12 = arith.maximumf %10, %5 : vector<16x16xf32>
    %c0_9 = arith.constant 0 : index
    %c0_10 = arith.constant 0 : index
    %13 = vector.load %arg8[%c0_9, %c0_10] : memref<16x16xf32, #tpu.memory_space<vmem>>, vector<16x16xf32>
    tpu.vector_store %arg8[%c0_9, %c0_10], %11 {strides = array<i32>} : memref<16x16xf32, #tpu.memory_space<vmem>>, vector<16x16xf32>,
    %c0_11 = arith.constant 0 : index
    %c0_12 = arith.constant 0 : index
    %14 = vector.load %arg9[%c0_11, %c0_12] : memref<16x16xf32, #tpu.memory_space<vmem>>, vector<16x16xf32>
    tpu.vector_store %arg9[%c0_11, %c0_12], %12 {strides = array<i32>} : memref<16x16xf32, #tpu.memory_space<vmem>>, vector<16x16xf32>,
    %c0_i32_13 = arith.constant 0 : i32
    %15 = arith.cmpi eq, %arg1, %c0_i32_13 : i32
    %16 = arith.extui %15 : i1 to i32
    %c0_i32_14 = arith.constant 0 : i32
    %17 = arith.cmpi ne, %16, %c0_i32_14 : i32
    scf.if %17 {
      %c0_15 = arith.constant 0 : index
      %c0_16 = arith.constant 0 : index
      %18 = vector.load %arg8[%c0_15, %c0_16] : memref<16x16xf32, #tpu.memory_space<vmem>>, vector<16x16xf32>
      %cst_17 = arith.constant dense<0.000000e+00> : vector<16xf32>
      %19 = vector.multi_reduction <add>, %18, %cst_17 [1] : vector<16x16xf32> to vector<16xf32>
      %20 = vector.shape_cast %19 : vector<16xf32> to vector<16x1xf32>
      %c0_18 = arith.constant 0 : index
      %c0_19 = arith.constant 0 : index
      %21 = vector.load %arg9[%c0_18, %c0_19] : memref<16x16xf32, #tpu.memory_space<vmem>>, vector<16x16xf32>
      %cst_20 = arith.constant dense<0xFF800000> : vector<16xf32>
      %22 = vector.multi_reduction <maximumf>, %21, %cst_20 [1] : vector<16x16xf32> to vector<16xf32>
      %23 = vector.shape_cast %22 : vector<16xf32> to vector<16x1xf32>
      %c0_21 = arith.constant 0 : index
      %c0_22 = arith.constant 0 : index
      %24 = vector.load %arg2[%c0_21, %c0_22] : memref<8x128xf32, #tpu.memory_space<vmem>>, vector<8x128xf32>
      %c0_23 = arith.constant 0 : index
      %c0_24 = arith.constant 0 : index
      %25 = vector.load %arg3[%c0_23, %c0_24] : memref<8x128xf32, #tpu.memory_space<vmem>>, vector<8x128xf32>
      %26 = arith.mulf %24, %25 : vector<8x128xf32>
      %cst_25 = arith.constant dense<0.000000e+00> : vector<8xf32>
      %27 = vector.multi_reduction <add>, %26, %cst_25 [1] : vector<8x128xf32> to vector<8xf32>
      %28 = vector.shape_cast %27 : vector<8xf32> to vector<8x1xf32>
      %cst_26 = arith.constant 1.000000e-01 : f32
      %29 = vector.broadcast %cst_26 : f32 to vector<8x1xf32>
      %30 = arith.mulf %28, %29 : vector<8x1xf32>
      %cst_27 = arith.constant 1.000000e+01 : f32
      %31 = vector.broadcast %cst_27 : f32 to vector<8x1xf32>
      %32 = arith.subf %30, %31 : vector<8x1xf32>
      %33 = math.exp %32 : vector<8x1xf32>
      %34 = vector.extract_strided_slice %20 {offsets = [0, 0], sizes = [8, 1], strides = [1, 1]} : vector<16x1xf32> to vector<8x1xf32>
      %35 = arith.subf %34, %33 : vector<8x1xf32>
      %36 = vector.extract_strided_slice %20 {offsets = [8, 0], sizes = [8, 1], strides = [1, 1]} : vector<16x1xf32> to vector<8x1xf32>
      %37 = arith.subf %36, %33 : vector<8x1xf32>
      %38 = math.log %35 : vector<8x1xf32>
      %39 = math.log %37 : vector<8x1xf32>
      %40 = arith.addf %38, %39 : vector<8x1xf32>
      %cst_28 = arith.constant 2.000000e+00 : f32
      %41 = vector.broadcast %cst_28 : f32 to vector<8x1xf32>
      %42 = arith.mulf %41, %32 : vector<8x1xf32>
      %43 = arith.subf %40, %42 : vector<8x1xf32>
      %cst_29 = arith.constant 6.250000e-02 : f32
      %44 = vector.broadcast %cst_29 : f32 to vector<8x1xf32>
      %45 = arith.mulf %43, %44 : vector<8x1xf32>
      %c0_30 = arith.constant 0 : index
      %c0_31 = arith.constant 0 : index
      %46 = vector.load %arg5[%c0_30, %c0_31] : memref<8x1xf32, #tpu.memory_space<vmem>>, vector<8x1xf32>
      tpu.vector_store %arg5[%c0_30, %c0_31], %45 {strides = array<i32>} : memref<8x1xf32, #tpu.memory_space<vmem>>, vector<8x1xf32>,
      %47 = vector.extract_strided_slice %23 {offsets = [0, 0], sizes = [8, 1], strides = [1, 1]} : vector<16x1xf32> to vector<8x1xf32>
      %48 = arith.cmpf oge, %30, %47 : vector<8x1xf32>
      %49 = arith.extui %48 : vector<8x1xi1> to vector<8x1xi32>
      %50 = arith.sitofp %49 : vector<8x1xi32> to vector<8x1xf32>
      %51 = vector.extract_strided_slice %23 {offsets = [8, 0], sizes = [8, 1], strides = [1, 1]} : vector<16x1xf32> to vector<8x1xf32>
      %52 = arith.cmpf oge, %30, %51 : vector<8x1xf32>
      %53 = arith.extui %52 : vector<8x1xi1> to vector<8x1xi32>
      %54 = arith.sitofp %53 : vector<8x1xi32> to vector<8x1xf32>
      %55 = arith.addf %50, %54 : vector<8x1xf32>
      %c0_32 = arith.constant 0 : index
      %c0_33 = arith.constant 0 : index
      %56 = vector.load %arg6[%c0_32, %c0_33] : memref<8x1xf32, #tpu.memory_space<vmem>>, vector<8x1xf32>
      tpu.vector_store %arg6[%c0_32, %c0_33], %55 {strides = array<i32>} : memref<8x1xf32, #tpu.memory_space<vmem>>, vector<8x1xf32>,
    } else {
    }
    return
  }
  func.func @transform_0(%arg0: i32, %arg1: i32) -> (i32, i32) {
    %c0_i32 = arith.constant 0 : i32
    %c0_i32_0 = arith.constant 0 : i32
    return %arg0, %c0_i32 : i32, i32
  }
  func.func @transform_1(%arg0: i32, %arg1: i32) -> (i32, i32) {
    %c0_i32 = arith.constant 0 : i32
    %c0_i32_0 = arith.constant 0 : i32
    return %arg0, %c0_i32 : i32, i32
  }
  func.func @transform_2(%arg0: i32, %arg1: i32) -> (i32, i32) {
    %c0_i32 = arith.constant 0 : i32
    %c0_i32_0 = arith.constant 0 : i32
    return %arg1, %c0_i32 : i32, i32
  }
  func.func @transform_3(%arg0: i32, %arg1: i32) -> (i32, i32) {
    %c0_i32 = arith.constant 0 : i32
    %c0_i32_0 = arith.constant 0 : i32
    return %arg0, %c0_i32 : i32, i32
  }
  func.func @transform_4(%arg0: i32, %arg1: i32) -> (i32, i32) {
    %c0_i32 = arith.constant 0 : i32
    %c0_i32_0 = arith.constant 0 : i32
    return %arg0, %c0_i32 : i32, i32
  }
}

</mosaic_0001>

<bundles_post_ra>
// kernel: tpu_custom_call.1
= control target key start
LH: loop header
LB: loop body
LE: loop exit
PB: predicated region body
PF: predicated region fallthrough
CT: control target
= control target key end

     0   :  { %10 = vsyncpa [#allocation6], 0  ;;  %s339_s0 = inlined_call_operand.hbm [shape: f32[8,128], index: 0, kind: input, shape index: {}]   ;;  %s340_s1 = inlined_call_operand.hbm [shape: f32[8,128], index: 1, kind: input, shape index: {}]   ;;  %s341_s2 = inlined_call_operand.hbm [shape: f32[16,128], index: 2, kind: input, shape index: {}]   ;;  %s342_s3 = inlined_call_operand.vmem [shape: f32[8,1], index: 3, kind: output, shape index: {0}]   ;;  %s343_s4 = inlined_call_operand.vmem [shape: f32[8,1], index: 4, kind: output, shape index: {1}]  }
   0x1   :  { %11 = vsyncpa [#allocation8], 0  ;;  %s28_s17 = sshll.u32 %s340_s1, 4  ;;  %s276_s18 = smov [#allocation7]   ;;  %s29_s17 = int_to_ptr.hbm [resolvable:$true] %s28_s17 }
   0x2   :  { %s30_s19 = sshll.u32 %s276_s18, 4  ;;  %s17_s22 = sshll.u32 %s339_s0, 4  ;;  %s31_s19 = int_to_ptr.vmem [resolvable:$true] %s30_s19  ;;  %s18_s22 = int_to_ptr.hbm [resolvable:$true] %s17_s22 }
   0x3   :  { %33 = dma.hbm_to_vmem [thread:$0]  %s29_s17, 128, %s31_s19, [#allocation8]  }
   0x4   :  { %s277_s23 = smov [#allocation5]   ;;  %s38_s27 = sshll.u32 %s341_s2, 4  ;;  %s39_s27 = int_to_ptr.hbm [resolvable:$true] %s38_s27 }
   0x5   :  { %s19_s24 = sshll.u32 %s277_s23, 4  ;;  %s278_s1 = smov [#allocation9]   ;;  %s20_s24 = int_to_ptr.vmem [resolvable:$true] %s19_s24 }
   0x6   :  { %22 = dma.hbm_to_vmem [thread:$0]  %s18_s22, 128, %s20_s24, [#allocation6]  }
   0x7   :  { %s40_s28 = sshll.u32 %s278_s1, 4  ;;  %s279_s29 = smov 128   ;;  %s41_s28 = int_to_ptr.vmem [resolvable:$true] %s40_s28 }
   0x8   :  { %s280_s30 = smov 8  }
   0x9   :  { %46 = dma.hbm_to_vmem [thread:$0]  %s39_s27, 256, %s41_s28, [#allocation8], %s279_s29, %s279_s29, %s280_s30  }
   0xa   :  { %272 = dma.done.wait [#allocation6], 128  }
   0xb   :  { %273 = vsyncadd [#allocation6], 4294967168 }
   0xc   :  { %274 = dma.done.wait [#allocation8], 384  }
   0xd   :  { %275 = vsyncadd [#allocation8], 4294966912  ;;  %vm67_vm0 = vcmask 130048   ;;  %v281_v0 = vmov 0.0   ;;  %v282_v1 = vmov -inf   ;;  %v75_v2 = vld [vmem:[#allocation9 + $0x8] sm:$0xff] }
   0xe   :  { %68 = vst.msk [vmem:[#allocation3] sm:$0xff] %vm67_vm0, %v281_v0  ;;  %90 = vmatpush.xpose.msra.mxu0 %v75_v2  ;;  %181 = vmatpush.xpose.msra.mxu1 %v75_v2  ;;  %v74_v3 = vld [vmem:[#allocation9] sm:$0xff]  ;;  %v63_v4 = vld [vmem:[#allocation5] sm:$0xff]  ;;  %v65_v5 = vld [vmem:[#allocation7] sm:$0xff]  ;;  %vm156_vm3 = vcmask 7168  }
   0xf   :  { %70 = vst.msk [vmem:[#allocation4] sm:$0xff] %vm67_vm0, %v282_v1  ;;  %v139_v6 = vmul.f32 %v65_v5, %v63_v4 }
  0x10   :  { %69 = vst.msk [vmem:[#allocation3 + $0x8] sm:$0xff] %vm67_vm0, %v281_v0 }
  0x11   :  { %71 = vst.msk [vmem:[#allocation4 + $0x8] sm:$0xff] %vm67_vm0, %v282_v1  ;;  %140 = vadd.xlane.f32.xlu0 %v139_v6 }
  0x12   :  { %91 = vmatpush.xpose.msra.mxu0 %v74_v3  ;;  %182 = vmatpush.xpose.msra.mxu1 %v74_v3 }
  0x15   :  { %92 = vmatmul.f32.vlgmr.msra.gmra.mxu0 %v63_v4  ;;  %95 = vmatmul.f32.vlgmr.msra.gmra.mxu1 %v65_v5  ;;  %v105_v17 = vld [vmem:[#allocation3] sm:$0xff] }
  0x16   :  { %v107_v7 = vld [vmem:[#allocation4] sm:$0xff] }
  0x17   :  { %v106_v18 = vld [vmem:[#allocation3 + $0x8] sm:$0xff] }
  0x18   :  { %v108_v8 = vld [vmem:[#allocation4 + $0x8] sm:$0xff] }
  0x84   :  { %v141_v31 = vpop.xlane.xlu0 %140 }
  0x85   :  { %v142_v32 = vmul.f32 0.1, %v141_v31 }
  0x87   :  { %v178_v33 = vadd.f32 -10.0, %v142_v32 }
  0x89   :  { %v144_v34 = vmul.f32 1.442695, %v178_v33  ;;  %v153_v49 = vmul.f32 2.0, %v178_v33 }
  0x92   :  { %v93_v9 = vpop.f32.mrf.mxu0  ;;  %v96_v10 = vpop.f32.mrf.mxu1 }
  0x93   :  { %v176_v11 = vadd.f32 -10.0, %v93_v9  ;;  %v111_v12 = vmax.f32 %v107_v7, %v93_v9  ;;  %v177_v13 = vadd.f32 -10.0, %v96_v10  ;;  %v112_v14 = vmax.f32 %v108_v8, %v96_v10 }
  0x95   :  { %v101_v15 = vmul.f32 1.442695, %v176_v11  ;;  %116 = vst.msk [vmem:[#allocation4] sm:$0xff] %vm67_vm0, %v111_v12  ;;  %v103_v16 = vmul.f32 1.442695, %v177_v13 }
  0x96   :  { %117 = vst.msk [vmem:[#allocation4 + $0x8] sm:$0xff] %vm67_vm0, %v112_v14 }
  0x97   :  { %190 = vpow2.f32 %v101_v15 }
  0x98   :  { %192 = vpow2.f32 %v103_v16 }
  0x99   :  { %194 = vpow2.f32 %v144_v34 }
  0x9c   :  { %v129_v29 = vld [vmem:[#allocation4] sm:$0xff] }
  0x9d   :  { %v191_v19 = vpop.eup %190  ;;  %v130_v20 = vld [vmem:[#allocation4 + $0x8] sm:$0xff]  ;;  %v131_v30 = vsel %vm67_vm0, %v129_v29, -inf }
  0x9e   :  { %v193_v21 = vpop.eup %192  ;;  %v109_v22 = vadd.f32 %v191_v19, %v105_v17  ;;  %v134_v23 = vsel %vm67_vm0, %v130_v20, -inf }
  0x9f   :  { %v110_v24 = vadd.f32 %v193_v21, %v106_v18  ;;  %135 = vmax.xlane.f32.xlu2 %v134_v23  ;;  %v195_v35 = vpop.eup %194 }
  0xa0   :  { %114 = vst.msk [vmem:[#allocation3] sm:$0xff] %vm67_vm0, %v109_v22 }
  0xa1   :  { %115 = vst.msk [vmem:[#allocation3 + $0x8] sm:$0xff] %vm67_vm0, %v110_v24 }
  0xa7   :  { %v121_v25 = vld [vmem:[#allocation3] sm:$0xff] }
  0xa8   :  { %v122_v26 = vld [vmem:[#allocation3 + $0x8] sm:$0xff]  ;;  %v123_v27 = vsel %vm67_vm0, %v121_v25, 0.0 }
  0xa9   :  { %v126_v28 = vsel %vm67_vm0, %v122_v26, 0.0  ;;  %124 = vadd.xlane.f32.xlu0 %v123_v27 }
  0xaa   :  { %127 = vadd.xlane.f32.xlu1 %v126_v28 }
  0xb2   :  { %132 = vmax.xlane.f32.xlu1 %v131_v30 }
 0x112   :  { %v136_v40 = vpop.xlane.xlu2 %135 }
 0x113   :  { %vm161_vm1 = vcmp.ge.f32.partialorder %v142_v32, %v136_v40 }
 0x114   :  { %v180_v45 = vsel %vm161_vm1, 1.0, %v281_v0 }
 0x11c   :  { %v125_v36 = vpop.xlane.xlu0 %124 }
 0x11d   :  { %v128_v37 = vpop.xlane.xlu1 %127  ;;  %v146_v38 = vsub.f32 %v125_v36, %v195_v35 }
 0x11e   :  { %v147_v39 = vsub.f32 %v128_v37, %v195_v35 }
 0x11f   :  { %196 = vlog2.f32 %v146_v38 }
 0x120   :  { %198 = vlog2.f32 %v147_v39 }
 0x125   :  { %v197_v41 = vpop.eup %196  ;;  %v133_v42 = vpop.xlane.xlu1 %132 }
 0x126   :  { %v199_v43 = vpop.eup %198  ;;  %v149_v44 = vmul.f32 0.6931472, %v197_v41  ;;  %vm158_vm2 = vcmp.ge.f32.partialorder %v142_v32, %v133_v42 }
 0x127   :  { %v151_v46 = vmul.f32 0.6931472, %v199_v43  ;;  %v179_v47 = vsel %vm158_vm2, 1.0, %v281_v0 }
 0x128   :  { %v164_v48 = vadd.f32 %v180_v45, %v179_v47 }
 0x129   :  { %v152_v50 = vadd.f32 %v151_v46, %v149_v44 }
 0x12a   :  { %165 = vst.msk [vmem:[%s343_s4] sm:$0xff] %vm156_vm3, %v164_v48 }
 0x12b   :  { %v154_v51 = vsub.f32 %v152_v50, %v153_v49 }
 0x12d   :  { %v155_v52 = vmul.f32 0.0625, %v154_v51 }
 0x12f   :  { %157 = vst.msk [vmem:[%s342_s3] sm:$0xff] %vm156_vm3, %v155_v52 }
 0x130   :  { %174 = vsyncpa [#allocation6], 1 }
 0x131   :  { %175 = vsyncpa [#allocation8], 1 }

</bundles_post_ra>
